<compile_context>
chip_gen: v7x
topology: tpu7x:2x2x1
jax: 0.10.0
libtpu: 0.0.40
codegen_flags: <defaults>
</compile_context>

<pallas_src>
import functools

import jax
import jax.numpy as jnp
from jax.experimental import pallas as pl
from jax.experimental.pallas import tpu as pltpu


def _round_up(x, m):
    return ((x + m - 1) // m) * m


def _default_epilogue_dtype():
    """bf16 VALU exists on v6e/v7x but not v5-generation: pick epilogue dtype."""
    try:
        kind = jax.devices()[0].device_kind.lower()
    except Exception:
        return jnp.float32
    return jnp.bfloat16 if any(t in kind for t in ("v6", "v7", "tpu7")) else jnp.float32


def _classifier_kernel(e1_ref, e2_ref, w1a_ref, w1b_ref, w1c_ref, b1_ref,
                       w2_ref, b2_ref, out_ref, *, epilogue_dtype):
    """One batch tile: e1/e2 [tm, E] f32 -> out_ref [tm, 128] f32 (col 0 valid)."""
    e1 = e1_ref[...]                                   # [tm, E] f32
    e2 = e2_ref[...]                                   # [tm, E] f32
    mm_dtype = w1a_ref.dtype                           # matmul (MXU) dtype, bf16

    # fc1 as two fused MXU matmuls over the two embedding halves
    # (bf16 operands, f32 accumulation).
    h = jnp.dot(e1.astype(mm_dtype), w1a_ref[...],
                preferred_element_type=jnp.float32)    # [tm, H]
    h = h + jnp.dot(e2.astype(mm_dtype), w1b_ref[...],
                    preferred_element_type=jnp.float32)

    # Cosine-similarity feature (unnormalized dot product, as in the PyTorch
    # model) computed from the *f32* inputs — XLU lane-reduce under the matmul.
    cos = jnp.sum(e1 * e2, axis=1, keepdims=True)      # [tm, 1] f32

    # Elementwise epilogue: rank-1 cosine-column update + bias + ReLU.
    # Runs in bf16 on v6e/v7x (bf16 VALU) and f32 on v5e.
    ed = epilogue_dtype
    h = h.astype(ed)
    h = h + cos.astype(ed) * w1c_ref[...].astype(ed) + b1_ref[...].astype(ed)
    h = jnp.maximum(h, 0.0)

    # TODO(synk): nn.Dropout(0.3) is identity at inference; training-mode
    # stochastic masking (pltpu.prng_*) is not implemented here.

    # fc2 on the MXU (idle otherwise): w2 is lane-padded to [H, 128] with only
    # column 0 nonzero, which keeps the output lane-dense (unmasked stores).
    out = jnp.dot(h.astype(w2_ref.dtype), w2_ref[...],
                  preferred_element_type=jnp.float32)  # [tm, 128]
    out_ref[...] = out + b2_ref[...]


def convert_params(params, embedding_dim, matmul_dtype=jnp.bfloat16):
    """One-time conversion of PyTorch-layout weights into kernel operands."""
    E = embedding_dim
    W1 = params["fc1_w"]                     # [H, 2E+1]  (nn.Linear layout)
    b1 = params["fc1_b"]                     # [H]
    W2 = params["fc2_w"]                     # [1, H]
    b2 = params["fc2_b"]                     # [1]
    H = W1.shape[0]

    w1a = jnp.transpose(W1[:, :E]).astype(matmul_dtype)         # [E, H]
    w1b = jnp.transpose(W1[:, E:2 * E]).astype(matmul_dtype)    # [E, H]
    w1c = jnp.transpose(W1[:, 2 * E:]).astype(jnp.float32)      # [1, H]

    # fc2 weight as a lane-padded [H, 128] MXU operand; only column 0 is real.
    w2 = jnp.zeros((H, 128), matmul_dtype)
    w2 = w2.at[:, 0].set(W2.reshape(H).astype(matmul_dtype))

    return {
        "w1a": w1a,                                            # [E, H]   bf16
        "w1b": w1b,                                            # [E, H]   bf16
        "w1c": w1c,                                            # [1, H]   f32
        "b1": b1.reshape(1, H).astype(jnp.float32),            # [1, H]   f32
        "w2": w2,                                              # [H, 128] bf16
        "b2": b2.reshape(1, 1).astype(jnp.float32),            # [1, 1]   f32
    }


def sentence_pair_classifier(e1, e2, cparams, *, block_rows=None,
                             epilogue_dtype=None):
    """e1, e2: [B, E] f32 arrays. cparams: output of convert_params()."""
    B, E = e1.shape
    H = cparams["b1"].shape[1]

    if epilogue_dtype is None:
        epilogue_dtype = _default_epilogue_dtype()
    if block_rows is None:
        # v5e: keep 512 (single vector-store slot + f32 epilogue);
        # v6e/v7x: 1024 amortizes per-grid-step pipeline overhead.
        block_rows = 512 if epilogue_dtype == jnp.float32 else 1024

    # Row tile: large tiles amortize the ~0.35us per-step overhead; when the
    # whole batch would fit one tile, split into >=2 tiles so v7x's two
    # TensorCores both get work on the "parallel" batch axis.
    if B > block_rows:
        tm = block_rows
    elif B > 16:
        tm = _round_up(-(-B // 2), 16)        # cdiv(B, 2) rounded up to 16
    else:
        tm = _round_up(B, 8)
    B_pad = _round_up(B, tm)

    # Only row padding (no concat / cast / lane pad) — a no-op when B % tm == 0.
    if B_pad != B:
        e1 = jnp.pad(e1, ((0, B_pad - B), (0, 0)))
        e2 = jnp.pad(e2, ((0, B_pad - B), (0, 0)))

    grid = (B_pad // tm,)

    w_bytes = sum(int(cparams[k].size) * cparams[k].dtype.itemsize
                  for k in ("w1a", "w1b", "w1c", "b1", "w2", "b2"))
    bytes_accessed = (2 * B_pad * E * 4          # activations (f32 in)
                      + w_bytes                  # resident weights (read once)
                      + B_pad * 128 * 4)         # lane-dense output
    cost = pl.CostEstimate(
        flops=2 * B_pad * (2 * E) * H            # fc1
              + 2 * B_pad * H * 128              # fc2 (lane-padded)
              + 8 * B_pad * H,                   # epilogue elementwise
        transcendentals=0,
        bytes_accessed=bytes_accessed)

    out = pl.pallas_call(
        functools.partial(_classifier_kernel, epilogue_dtype=epilogue_dtype),
        out_shape=jax.ShapeDtypeStruct((B_pad, 128), jnp.float32),
        grid=grid,
        in_specs=[
            pl.BlockSpec((tm, E), lambda i: (i, 0)),      # e1 tile
            pl.BlockSpec((tm, E), lambda i: (i, 0)),      # e2 tile
            pl.BlockSpec((E, H), lambda i: (0, 0)),       # fc1 weight half (e1), resident
            pl.BlockSpec((E, H), lambda i: (0, 0)),       # fc1 weight half (e2), resident
            pl.BlockSpec((1, H), lambda i: (0, 0)),       # fc1 cosine column
            pl.BlockSpec((1, H), lambda i: (0, 0)),       # fc1 bias
            pl.BlockSpec((H, 128), lambda i: (0, 0)),     # fc2 weight (lane-padded), resident
            pl.BlockSpec((1, 1), lambda i: (0, 0)),       # fc2 bias
        ],
        out_specs=pl.BlockSpec((tm, 128), lambda i: (i, 0)),
        compiler_params=pltpu.CompilerParams(
            dimension_semantics=("parallel",),
            vmem_limit_bytes=32 * 1024 * 1024),
        cost_estimate=cost,
    )(e1, e2, cparams["w1a"], cparams["w1b"], cparams["w1c"],
      cparams["b1"], cparams["w2"], cparams["b2"])

    # Only column 0 carries the logit; rows beyond B are padding.
    return out[:B, :1]


def init_params(key, embedding_dim, hidden_dim):
    """Deterministic init mimicking nn.Linear shapes (uniform +/- 1/sqrt(fan_in))."""
    in1 = embedding_dim * 2 + 1
    k1, k2, k3, k4 = jax.random.split(key, 4)
    lim1 = 1.0 / jnp.sqrt(in1)
    lim2 = 1.0 / jnp.sqrt(hidden_dim)
    return {
        "fc1_w": jax.random.uniform(k1, (hidden_dim, in1), jnp.float32, -lim1, lim1),
        "fc1_b": jax.random.uniform(k2, (hidden_dim,), jnp.float32, -lim1, lim1),
        "fc2_w": jax.random.uniform(k3, (1, hidden_dim), jnp.float32, -lim2, lim2),
        "fc2_b": jax.random.uniform(k4, (1,), jnp.float32, -lim2, lim2),
    }


if __name__ == "__main__":
    # Small shapes consistent with the module (hidden_dim default is 512).
    B, E, H = 8, 64, 512

    key = jax.random.PRNGKey(0)
    k_e1, k_e2, k_p = jax.random.split(key, 3)
    e1 = jax.random.normal(k_e1, (B, E), jnp.float32)
    e2 = jax.random.normal(k_e2, (B, E), jnp.float32)
    params = init_params(k_p, E, H)

    cparams = convert_params(params, E)           # one-time weight conversion
    classify = jax.jit(sentence_pair_classifier)

    logits = classify(e1, e2, cparams)
    jax.block_until_ready(logits)

    # Pure-JAX f32 reference with the original PyTorch semantics; remaining
    # delta is bf16 MXU operands + (v6e/v7x) bf16 epilogue rounding.
    cos = jnp.sum(e1 * e2, axis=1, keepdims=True)
    combined = jnp.concatenate([e1, e2, cos], axis=1)               # [B, 2E+1]
    h_ref = jnp.maximum(combined @ params["fc1_w"].T + params["fc1_b"], 0.0)
    ref = h_ref @ params["fc2_w"].T + params["fc2_b"]               # [B, 1]

    assert logits.shape == (B, 1)
    assert jnp.allclose(logits, ref, atol=5e-2, rtol=5e-2), (
        float(jnp.max(jnp.abs(logits - ref))))

    print("KERNEL_OK")
</pallas_src>

<mosaic_0001>
module attributes {stable_mosaic.version = 11 : i64} {
  func.func @_classifier_kernel(%arg0: i32, %arg1: memref<8x64xf32, #tpu.memory_space<vmem>>, %arg2: memref<8x64xf32, #tpu.memory_space<vmem>>, %arg3: memref<64x512xbf16, #tpu.memory_space<vmem>>, %arg4: memref<64x512xbf16, #tpu.memory_space<vmem>>, %arg5: memref<1x512xf32, #tpu.memory_space<vmem>>, %arg6: memref<1x512xf32, #tpu.memory_space<vmem>>, %arg7: memref<512x128xbf16, #tpu.memory_space<vmem>>, %arg8: memref<1x1xf32, #tpu.memory_space<vmem>>, %arg9: memref<8x128xf32, #tpu.memory_space<vmem>>) attributes {dimension_semantics = [#tpu.dimension_semantics<parallel>], iteration_bounds = array<i64: 1>, scalar_prefetch = 0 : i64, scratch_operands = 0 : i64, tpu.core_type = #tpu.core_type<tc>, window_params = [{transform_indices = @transform_0, window_bounds = array<i64: 8, 64>}, {transform_indices = @transform_1, window_bounds = array<i64: 8, 64>}, {pipeline_mode = #tpu.pipeline_mode<synchronous>, transform_indices = @transform_2, window_bounds = array<i64: 64, 512>}, {pipeline_mode = #tpu.pipeline_mode<synchronous>, transform_indices = @transform_3, window_bounds = array<i64: 64, 512>}, {pipeline_mode = #tpu.pipeline_mode<synchronous>, transform_indices = @transform_4, window_bounds = array<i64: 1, 512>}, {pipeline_mode = #tpu.pipeline_mode<synchronous>, transform_indices = @transform_5, window_bounds = array<i64: 1, 512>}, {pipeline_mode = #tpu.pipeline_mode<synchronous>, transform_indices = @transform_6, window_bounds = array<i64: 512, 128>}, {pipeline_mode = #tpu.pipeline_mode<synchronous>, transform_indices = @transform_7, window_bounds = array<i64: 1, 1>}, {transform_indices = @transform_8, window_bounds = array<i64: 8, 128>}]} {
    %c0 = arith.constant 0 : index
    %c0_0 = arith.constant 0 : index
    %0 = vector.load %arg1[%c0, %c0_0] : memref<8x64xf32, #tpu.memory_space<vmem>>, vector<8x64xf32>
    %c0_1 = arith.constant 0 : index
    %c0_2 = arith.constant 0 : index
    %1 = vector.load %arg2[%c0_1, %c0_2] : memref<8x64xf32, #tpu.memory_space<vmem>>, vector<8x64xf32>
    %2 = arith.truncf %0 : vector<8x64xf32> to vector<8x64xbf16>
    %c0_3 = arith.constant 0 : index
    %c0_4 = arith.constant 0 : index
    %3 = vector.load %arg3[%c0_3, %c0_4] : memref<64x512xbf16, #tpu.memory_space<vmem>>, vector<64x512xbf16>
    %cst = arith.constant dense<0.000000e+00> : vector<8x512xf32>
    %4 = tpu.matmul %2, %3, %cst {dimension_numbers = #tpu.dot_dimension_numbers<[1], [0], [0], [1], [0, 0, 1, 1], [], []>} : vector<8x64xbf16>, vector<64x512xbf16>, vector<8x512xf32> -> vector<8x512xf32>
    %5 = arith.truncf %1 : vector<8x64xf32> to vector<8x64xbf16>
    %c0_5 = arith.constant 0 : index
    %c0_6 = arith.constant 0 : index
    %6 = vector.load %arg4[%c0_5, %c0_6] : memref<64x512xbf16, #tpu.memory_space<vmem>>, vector<64x512xbf16>
    %cst_7 = arith.constant dense<0.000000e+00> : vector<8x512xf32>
    %7 = tpu.matmul %5, %6, %cst_7 {dimension_numbers = #tpu.dot_dimension_numbers<[1], [0], [0], [1], [0, 0, 1, 1], [], []>} : vector<8x64xbf16>, vector<64x512xbf16>, vector<8x512xf32> -> vector<8x512xf32>
    %8 = arith.addf %4, %7 : vector<8x512xf32>
    %9 = arith.mulf %0, %1 : vector<8x64xf32>
    %cst_8 = arith.constant dense<0.000000e+00> : vector<8xf32>
    %10 = vector.multi_reduction <add>, %9, %cst_8 [1] : vector<8x64xf32> to vector<8xf32>
    %11 = vector.shape_cast %10 : vector<8xf32> to vector<8x1xf32>
    %c0_9 = arith.constant 0 : index
    %c0_10 = arith.constant 0 : index
    %12 = vector.load %arg5[%c0_9, %c0_10] : memref<1x512xf32, #tpu.memory_space<vmem>>, vector<1x512xf32>
    %13 = vector.broadcast %11 : vector<8x1xf32> to vector<8x512xf32>
    %14 = vector.broadcast %12 : vector<1x512xf32> to vector<8x512xf32>
    %15 = arith.mulf %13, %14 : vector<8x512xf32>
    %16 = arith.addf %8, %15 : vector<8x512xf32>
    %c0_11 = arith.constant 0 : index
    %c0_12 = arith.constant 0 : index
    %17 = vector.load %arg6[%c0_11, %c0_12] : memref<1x512xf32, #tpu.memory_space<vmem>>, vector<1x512xf32>
    %18 = vector.broadcast %17 : vector<1x512xf32> to vector<8x512xf32>
    %19 = arith.addf %16, %18 : vector<8x512xf32>
    %cst_13 = arith.constant 0.000000e+00 : f32
    %20 = vector.broadcast %cst_13 : f32 to vector<8x512xf32>
    %21 = arith.maximumf %19, %20 : vector<8x512xf32>
    %22 = arith.truncf %21 : vector<8x512xf32> to vector<8x512xbf16>
    %c0_14 = arith.constant 0 : index
    %c0_15 = arith.constant 0 : index
    %23 = vector.load %arg7[%c0_14, %c0_15] : memref<512x128xbf16, #tpu.memory_space<vmem>>, vector<512x128xbf16>
    %cst_16 = arith.constant dense<0.000000e+00> : vector<8x128xf32>
    %24 = tpu.matmul %22, %23, %cst_16 {dimension_numbers = #tpu.dot_dimension_numbers<[1], [0], [0], [1], [0, 0, 1, 1], [], []>} : vector<8x512xbf16>, vector<512x128xbf16>, vector<8x128xf32> -> vector<8x128xf32>
    %c0_17 = arith.constant 0 : index
    %c0_18 = arith.constant 0 : index
    %25 = vector.load %arg8[%c0_17, %c0_18] : memref<1x1xf32, #tpu.memory_space<vmem>>, vector<1x1xf32>
    %26 = vector.broadcast %25 : vector<1x1xf32> to vector<8x128xf32>
    %27 = arith.addf %24, %26 : vector<8x128xf32>
    %c0_19 = arith.constant 0 : index
    %c0_20 = arith.constant 0 : index
    %28 = vector.load %arg9[%c0_19, %c0_20] : memref<8x128xf32, #tpu.memory_space<vmem>>, vector<8x128xf32>
    tpu.vector_store %arg9[%c0_19, %c0_20], %27 {strides = array<i32>} : memref<8x128xf32, #tpu.memory_space<vmem>>, vector<8x128xf32>,
    return
  }
  func.func @transform_0(%arg0: i32) -> (i32, i32) {
    %c0_i32 = arith.constant 0 : i32
    %c0_i32_0 = arith.constant 0 : i32
    return %arg0, %c0_i32 : i32, i32
  }
  func.func @transform_1(%arg0: i32) -> (i32, i32) {
    %c0_i32 = arith.constant 0 : i32
    %c0_i32_0 = arith.constant 0 : i32
    return %arg0, %c0_i32 : i32, i32
  }
  func.func @transform_2(%arg0: i32) -> (i32, i32) {
    %c0_i32 = arith.constant 0 : i32
    %c0_i32_0 = arith.constant 0 : i32
    %c0_i32_1 = arith.constant 0 : i32
    return %c0_i32, %c0_i32_0 : i32, i32
  }
  func.func @transform_3(%arg0: i32) -> (i32, i32) {
    %c0_i32 = arith.constant 0 : i32
    %c0_i32_0 = arith.constant 0 : i32
    %c0_i32_1 = arith.constant 0 : i32
    return %c0_i32, %c0_i32_0 : i32, i32
  }
  func.func @transform_4(%arg0: i32) -> (i32, i32) {
    %c0_i32 = arith.constant 0 : i32
    %c0_i32_0 = arith.constant 0 : i32
    %c0_i32_1 = arith.constant 0 : i32
    return %c0_i32, %c0_i32_0 : i32, i32
  }
  func.func @transform_5(%arg0: i32) -> (i32, i32) {
    %c0_i32 = arith.constant 0 : i32
    %c0_i32_0 = arith.constant 0 : i32
    %c0_i32_1 = arith.constant 0 : i32
    return %c0_i32, %c0_i32_0 : i32, i32
  }
  func.func @transform_6(%arg0: i32) -> (i32, i32) {
    %c0_i32 = arith.constant 0 : i32
    %c0_i32_0 = arith.constant 0 : i32
    %c0_i32_1 = arith.constant 0 : i32
    return %c0_i32, %c0_i32_0 : i32, i32
  }
  func.func @transform_7(%arg0: i32) -> (i32, i32) {
    %c0_i32 = arith.constant 0 : i32
    %c0_i32_0 = arith.constant 0 : i32
    %c0_i32_1 = arith.constant 0 : i32
    return %c0_i32, %c0_i32_0 : i32, i32
  }
  func.func @transform_8(%arg0: i32) -> (i32, i32) {
    %c0_i32 = arith.constant 0 : i32
    %c0_i32_0 = arith.constant 0 : i32
    return %arg0, %c0_i32 : i32, i32
  }
}

</mosaic_0001>

<bundles_post_ra>
// kernel: sentence_pair_classifier.1
= control target key start
LH: loop header
LB: loop body
LE: loop exit
PB: predicated region body
PF: predicated region fallthrough
CT: control target
= control target key end

     0   :  { %s1343_s0 = inlined_call_operand.hbm [shape: f32[8,64], index: 0, kind: input, shape index: {}]   ;;  %s1344_s1 = inlined_call_operand.hbm [shape: f32[8,64], index: 1, kind: input, shape index: {}]   ;;  %s1345_s2 = inlined_call_operand.hbm [shape: bf16[64,512], index: 2, kind: input, shape index: {}]   ;;  %s1346_s3 = inlined_call_operand.hbm [shape: bf16[64,512], index: 3, kind: input, shape index: {}]   ;;  %s1347_s4 = inlined_call_operand.vmem [shape: f32[1,512], index: 4, kind: input, shape index: {}]   ;;  %s1348_s5 = inlined_call_operand.vmem [shape: f32[1,512], index: 5, kind: input, shape index: {}]   ;;  %s1349_s6 = inlined_call_operand.hbm [shape: bf16[512,128], index: 6, kind: input, shape index: {}]   ;;  %s1350_s7 = inlined_call_operand.<no memory space> [shape: f32[1,1], index: 7, kind: input, shape index: {}]   ;;  %s1351_s8 = inlined_call_operand.vmem [shape: f32[8,128], index: 8, kind: output, shape index: {}]  }
   0x1   :  { %v13_v0 = vstv %s1350_s7 }
   0x2   :  { %14 = vst [vmem:[#allocation2] sm:$0x1] %v13_v0 }
   0x3   :  { %15 = vsyncpa [#allocation4], 0 }
   0x4   :  { %16 = vsyncpa [#allocation6], 0 }
   0x5   :  { %17 = vsyncpa [#allocation9], 0  ;;  %s1205_s29 = smov [#allocation5]   ;;  %s1089_s11 = scalar_lea.hbm %s1344_s1, 128 }
   0x6   :  { %s34_s30 = sshll.u32 %s1205_s29, 4  ;;  %p1090_p0 = scmp.ne.s32.totalorder %s1344_s1, %s1089_s11  ;;  %s35_s30 = int_to_ptr.vmem [resolvable:$true] %s34_s30 }
   0x7   :  { %p1093_p1 = scmp.lt.u32.totalorder %s1089_s11, %s1344_s1 }
   0x9   :  { %p1095_p2 = pnand %p1093_p1, %p1090_p0 }
   0xb   :  { %1098 = shalt.err (!%p1095_p2)
}
   0xc   :  { %s1099_s7 = scalar_lea.vmem %s35_s30, 128  ;;  %p1104_p4 = scmp.lt.s32.totalorder %s35_s30, %s35_s30 }
   0xd   :  { %p1100_p3 = scmp.ne.s32.totalorder %s35_s30, %s1099_s7  ;;  %p1105_p5 = scmp.lt.s32.totalorder %s1099_s7, %s1099_s7 }
   0xf   :  { %p1106_p6 = por %p1105_p5, %p1104_p4 }
  0x11   :  { %p1107_p7 = pnand %p1106_p6, %p1100_p3 }
  0x13   :  { %1110 = shalt.err (!%p1107_p7)
}
  0x14   :  { %37 = dma.hbm_to_vmem [thread:$0]  %s1344_s1, 128, %s35_s30, [#allocation6]  }
  0x15   :  { %s1206_s18 = smov [#allocation8]   ;;  %s1207_s20 = smov [#allocation3]  }
  0x16   :  { %s55_s19 = sshll.u32 %s1206_s18, 4  ;;  %s24_s21 = sshll.u32 %s1207_s20, 4  ;;  %s56_s19 = int_to_ptr.vmem [resolvable:$true] %s55_s19  ;;  %s25_s21 = int_to_ptr.vmem [resolvable:$true] %s24_s21 }
  0x17   :  { %s1111_s24 = scalar_lea.hbm %s1346_s3, 2048 }
  0x18   :  { %p1112_p8 = scmp.ne.s32.totalorder %s1346_s3, %s1111_s24  ;;  %p1115_p9 = scmp.lt.u32.totalorder %s1111_s24, %s1346_s3 }
  0x1a   :  { %p1117_p10 = pnand %p1115_p9, %p1112_p8 }
  0x1c   :  { %1120 = shalt.err (!%p1117_p10)
}
  0x1d   :  { %s1121_s1 = scalar_lea.vmem %s56_s19, 2048  ;;  %p1126_p12 = scmp.lt.s32.totalorder %s56_s19, %s56_s19 }
  0x1e   :  { %p1122_p11 = scmp.ne.s32.totalorder %s56_s19, %s1121_s1  ;;  %p1127_p13 = scmp.lt.s32.totalorder %s1121_s1, %s1121_s1 }
  0x20   :  { %p1128_p0 = por %p1127_p13, %p1126_p12 }
  0x22   :  { %p1129_p1 = pnand %p1128_p0, %p1122_p11 }
  0x24   :  { %1132 = shalt.err (!%p1129_p1)
}
  0x25   :  { %s1208_s29 = smov 256   ;;  %s1209_s30 = smov 16  }
  0x26   :  { %61 = dma.hbm_to_vmem [thread:$0]  %s1346_s3, 2048, %s56_s19, [#allocation9], %s1208_s29, %s1208_s29, %s1209_s30  }
  0x27   :  { %s1133_s13 = scalar_lea.hbm %s1343_s0, 128 }
  0x28   :  { %p1134_p2 = scmp.ne.s32.totalorder %s1343_s0, %s1133_s13  ;;  %p1137_p3 = scmp.lt.u32.totalorder %s1133_s13, %s1343_s0 }
  0x2a   :  { %p1139_p4 = pnand %p1137_p3, %p1134_p2 }
  0x2c   :  { %1142 = shalt.err (!%p1139_p4)
}
  0x2d   :  { %s1143_s17 = scalar_lea.vmem %s25_s21, 128  ;;  %p1148_p6 = scmp.lt.s32.totalorder %s25_s21, %s25_s21 }
  0x2e   :  { %p1144_p5 = scmp.ne.s32.totalorder %s25_s21, %s1143_s17  ;;  %p1149_p7 = scmp.lt.s32.totalorder %s1143_s17, %s1143_s17 }
  0x30   :  { %p1150_p8 = por %p1149_p7, %p1148_p6 }
  0x32   :  { %p1151_p9 = pnand %p1150_p8, %p1144_p5 }
  0x34   :  { %1154 = shalt.err (!%p1151_p9)
}
  0x35   :  { %27 = dma.hbm_to_vmem [thread:$0]  %s1343_s0, 128, %s25_s21, [#allocation4]  }
  0x36   :  { %s1210_s19 = smov [#allocation7]   ;;  %s1211_s22 = smov [#allocation10]  }
  0x37   :  { %s43_s20 = sshll.u32 %s1210_s19, 4  ;;  %s71_s23 = sshll.u32 %s1211_s22, 4  ;;  %s44_s20 = int_to_ptr.vmem [resolvable:$true] %s43_s20  ;;  %s72_s23 = int_to_ptr.vmem [resolvable:$true] %s71_s23 }
  0x38   :  { %s1155_s26 = scalar_lea.hbm %s1345_s2, 2048 }
  0x39   :  { %p1156_p10 = scmp.ne.s32.totalorder %s1345_s2, %s1155_s26  ;;  %p1159_p11 = scmp.lt.u32.totalorder %s1155_s26, %s1345_s2 }
  0x3b   :  { %p1161_p12 = pnand %p1159_p11, %p1156_p10 }
  0x3d   :  { %1164 = shalt.err (!%p1161_p12)
}
  0x3e   :  { %s1165_s0 = scalar_lea.vmem %s44_s20, 2048  ;;  %p1170_p0 = scmp.lt.s32.totalorder %s44_s20, %s44_s20 }
  0x3f   :  { %p1166_p13 = scmp.ne.s32.totalorder %s44_s20, %s1165_s0  ;;  %p1171_p1 = scmp.lt.s32.totalorder %s1165_s0, %s1165_s0 }
  0x41   :  { %p1172_p2 = por %p1171_p1, %p1170_p0 }
  0x43   :  { %p1173_p3 = pnand %p1172_p2, %p1166_p13 }
  0x45   :  { %1176 = shalt.err (!%p1173_p3)
}
  0x46   :  { %49 = dma.hbm_to_vmem [thread:$0]  %s1345_s2, 2048, %s44_s20, [#allocation6], %s1208_s29, %s1208_s29, %s1209_s30  }
  0x47   :  { %s1177_s13 = scalar_lea.hbm %s1349_s6, 4096 }
  0x48   :  { %p1178_p4 = scmp.ne.s32.totalorder %s1349_s6, %s1177_s13  ;;  %p1181_p5 = scmp.lt.u32.totalorder %s1177_s13, %s1349_s6 }
  0x4a   :  { %p1183_p6 = pnand %p1181_p5, %p1178_p4 }
  0x4c   :  { %1186 = shalt.err (!%p1183_p6)
}
  0x4d   :  { %s1187_s17 = scalar_lea.vmem %s72_s23, 4096  ;;  %p1192_p8 = scmp.lt.s32.totalorder %s72_s23, %s72_s23 }
  0x4e   :  { %p1188_p7 = scmp.ne.s32.totalorder %s72_s23, %s1187_s17  ;;  %p1193_p9 = scmp.lt.s32.totalorder %s1187_s17, %s1187_s17 }
  0x50   :  { %p1194_p10 = por %p1193_p9, %p1192_p8 }
  0x52   :  { %p1195_p11 = pnand %p1194_p10, %p1188_p7 }
  0x54   :  { %1198 = shalt.err (!%p1195_p11)
}
  0x55   :  { %s1212_s2 = smov 64   ;;  %s1213_s29 = smov 4  }
  0x56   :  { %77 = dma.hbm_to_vmem [thread:$0]  %s1349_s6, 4096, %s72_s23, [#allocation9], %s1212_s2, %s1212_s2, %s1213_s29  }
  0x57   :  { %1199 = dma.done.wait [#allocation4], 128  }
  0x58   :  { %1200 = vsyncadd [#allocation4], 4294967168 }
  0x59   :  { %1201 = dma.done.wait [#allocation6], 2176  }
  0x5a   :  { %1202 = vsyncadd [#allocation6], 4294965120 }
  0x5b   :  { %1203 = dma.done.wait [#allocation9], 6144  }
  0x5c   :  { %1204 = vsyncadd [#allocation9], 4294961152  ;;  %v1214_v1 = vmov 0   ;;  %v1009_v2 = vld [vmem:[#allocation8 + $0x4] ss:$16 sps:$4 sm:$0xff]   ;;  %v97_v18 = vld [vmem:[#allocation5] sm:$0xff] }
  0x5d   :  { %248 = vmatprep.mubr.bf16.mxu0 %v1214_v1  ;;  %289 = vmatprep.mubr.bf16.mxu1 %v1214_v1  ;;  %v1011_v3 = vld [vmem:[#allocation8 + $0xc] ss:$16 sps:$4 sm:$0xff]   ;;  %v1013_v4 = vld [vmem:[#allocation8] ss:$16 sps:$4 sm:$0xff]   ;;  %v1014_v5 = vld [vmem:[#allocation8 + $0x8] ss:$16 sps:$4 sm:$0xff]   ;;  %v115_v21 = vpack.c.bf16 %v97_v18, %v97_v18 }
  0x5e   :  { %1008 = vset.pattern.permute.xlu0 %v1214_v1  ;;  %216 = vmatprep.subr.bf16.mxu0 %v1009_v2  ;;  %v1015_v6 = vld [vmem:[#allocation8 + $0x24] ss:$16 sps:$4 sm:$0xff]   ;;  %v1017_v7 = vld [vmem:[#allocation8 + $0x2c] ss:$16 sps:$4 sm:$0xff]   ;;  %v1019_v8 = vld [vmem:[#allocation8 + $0x20] ss:$16 sps:$4 sm:$0xff]  }
  0x5f   :  { %257 = vmatprep.subr.bf16.mxu1 %v1011_v3  ;;  %217 = vmatpush1.bf16.msra.mxu0 %v1013_v4  ;;  %v1020_v9 = vld [vmem:[#allocation8 + $0x28] ss:$16 sps:$4 sm:$0xff]   ;;  %v1021_v10 = vld [vmem:[#allocation8 + $0x44] ss:$16 sps:$4 sm:$0xff]   ;;  %v1023_v11 = vld [vmem:[#allocation8 + $0x4c] ss:$16 sps:$4 sm:$0xff]  }
  0x60   :  { %258 = vmatpush1.bf16.msra.mxu1 %v1014_v5  ;;  %218 = vmatprep.subr.bf16.mxu0 %v1015_v6  ;;  %v1025_v12 = vld [vmem:[#allocation8 + $0x40] ss:$16 sps:$4 sm:$0xff]   ;;  %v1026_v13 = vld [vmem:[#allocation8 + $0x48] ss:$16 sps:$4 sm:$0xff]   ;;  %v1027_v14 = vld [vmem:[#allocation8 + $0x64] ss:$16 sps:$4 sm:$0xff]  }
  0x61   :  { %259 = vmatprep.subr.bf16.mxu1 %v1017_v7  ;;  %v1029_v15 = vld [vmem:[#allocation8 + $0x6c] ss:$16 sps:$4 sm:$0xff]   ;;  %v1031_v16 = vld [vmem:[#allocation8 + $0x60] ss:$16 sps:$4 sm:$0xff]   ;;  %v1032_v17 = vld [vmem:[#allocation8 + $0x68] ss:$16 sps:$4 sm:$0xff]  }
  0x62   :  { %v1035_v19 = vld [vmem:[#allocation7 + $0x4] ss:$16 sps:$4 sm:$0xff]   ;;  %v1038_v20 = vld [vmem:[#allocation7 + $0xc] ss:$16 sps:$4 sm:$0xff]   ;;  %v1033_v22 = vld [vmem:[#allocation7] ss:$16 sps:$4 sm:$0xff]  }
  0x63   :  { %219 = vmatpush1.bf16.msra.mxu0 %v1019_v8  ;;  %vm212_vm0 = vcmask 523264   ;;  %v1036_v23 = vld [vmem:[#allocation7 + $0x8] ss:$16 sps:$4 sm:$0xff]   ;;  %v1041_v24 = vld [vmem:[#allocation7 + $0x24] ss:$16 sps:$4 sm:$0xff]  }
  0x64   :  { %260 = vmatpush1.bf16.msra.mxu1 %v1020_v9  ;;  %220 = vmatprep.subr.bf16.mxu0 %v1021_v10  ;;  %v1044_v25 = vld [vmem:[#allocation7 + $0x2c] ss:$16 sps:$4 sm:$0xff]   ;;  %v1039_v26 = vld [vmem:[#allocation7 + $0x20] ss:$16 sps:$4 sm:$0xff]   ;;  %v1042_v27 = vld [vmem:[#allocation7 + $0x28] ss:$16 sps:$4 sm:$0xff]   ;;  %v469_v9 = vlaneseq }
  0x65   :  { %261 = vmatprep.subr.bf16.mxu1 %v1023_v11  ;;  %v1047_v28 = vld [vmem:[#allocation7 + $0x44] ss:$16 sps:$4 sm:$0xff]   ;;  %v1050_v29 = vld [vmem:[#allocation7 + $0x4c] ss:$16 sps:$4 sm:$0xff]   ;;  %v1045_v31 = vld [vmem:[#allocation7 + $0x40] ss:$16 sps:$4 sm:$0xff]  }
  0x66   :  { %v96_v30 = vld [vmem:[#allocation3] sm:$0xff]  ;;  %v1048_v32 = vld [vmem:[#allocation7 + $0x48] ss:$16 sps:$4 sm:$0xff]   ;;  %v1056_v36 = vld [vmem:[#allocation7 + $0x6c] ss:$16 sps:$4 sm:$0xff]  }
  0x67   :  { %221 = vmatpush1.bf16.msra.mxu0 %v1025_v12  ;;  %v463_v33 = vmul.f32 %v97_v18, %v96_v30  ;;  %v1053_v34 = vld [vmem:[#allocation7 + $0x64] ss:$16 sps:$4 sm:$0xff]   ;;  %v1051_v37 = vld [vmem:[#allocation7 + $0x60] ss:$16 sps:$4 sm:$0xff]   ;;  %v1054_v38 = vld [vmem:[#allocation7 + $0x68] ss:$16 sps:$4 sm:$0xff]   ;;  %v98_v43 = vpack.c.bf16 %v96_v30, %v96_v30 }
  0x68   :  { %262 = vmatpush1.bf16.msra.mxu1 %v1026_v13  ;;  %222 = vmatprep.subr.bf16.mxu0 %v1027_v14  ;;  %v1057_v39 = vld [vmem:[#allocation10 + $0x40] sm:$0xff]   ;;  %v1061_v44 = vld [vmem:[#allocation10 + $0x48] sm:$0xff]   ;;  %v1065_v48 = vld [vmem:[#allocation10 + $0x50] sm:$0xff]   ;;  %v470_v18 = vshrl.u32 %v469_v9, 7 }
  0x69   :  { %263 = vmatprep.subr.bf16.mxu1 %v1029_v15  ;;  %v464_v35 = vsel %vm212_vm0, %v463_v33, 0.0  ;;  %v1058_v40 = vld [vmem:[#allocation10 + $0xc0] sm:$0xff]   ;;  %v1062_v45 = vld [vmem:[#allocation10 + $0xc8] sm:$0xff]   ;;  %v1066_v49 = vld [vmem:[#allocation10 + $0xd0] sm:$0xff]  }
  0x6a   :  { %465 = vadd.xlane.f32.xlu0 %v464_v35  ;;  %v1059_v41 = vld [vmem:[#allocation10] sm:$0xff]   ;;  %v1063_v46 = vld [vmem:[#allocation10 + $0x8] sm:$0xff]   ;;  %v1067_v50 = vld [vmem:[#allocation10 + $0x10] sm:$0xff]  }
  0x6b   :  { %223 = vmatpush1.bf16.msra.mxu0 %v1031_v16  ;;  %v1060_v42 = vld [vmem:[#allocation10 + $0x80] sm:$0xff]   ;;  %v1064_v47 = vld [vmem:[#allocation10 + $0x88] sm:$0xff]   ;;  %v1068_v51 = vld [vmem:[#allocation10 + $0x90] sm:$0xff]  }
  0x6c   :  { %264 = vmatpush1.bf16.msra.mxu1 %v1032_v17  ;;  %381 = vmatprep.subr.bf16.mxu0 %v1035_v19  ;;  %v1069_v52 = vld [vmem:[#allocation10 + $0x58] sm:$0xff]   ;;  %v1073_v56 = vld [vmem:[#allocation10 + $0x60] sm:$0xff]   ;;  %v1077_v60 = vld [vmem:[#allocation10 + $0x68] sm:$0xff]   ;;  %v471_v19 = vsub.s32 0, %v470_v18 }
  0x6d   :  { %422 = vmatprep.subr.bf16.mxu1 %v1038_v20  ;;  %v1070_v53 = vld [vmem:[#allocation10 + $0xd8] sm:$0xff]   ;;  %v1074_v57 = vld [vmem:[#allocation10 + $0xe0] sm:$0xff]   ;;  %v1078_v61 = vld [vmem:[#allocation10 + $0xe8] sm:$0xff]   ;;  %v479_v20 = vsub.s32 2, %v470_v18 }
  0x6e   :  { %901 = vmatmul.mubr.msk.bf16.vlgmr.msra.gmra.mrb[0].mxu0 %vm212_vm0, %v115_v21  ;;  %v1071_v54 = vld [vmem:[#allocation10 + $0x18] sm:$0xff]   ;;  %v1075_v58 = vld [vmem:[#allocation10 + $0x20] sm:$0xff]   ;;  %v1079_v62 = vld [vmem:[#allocation10 + $0x28] sm:$0xff]  }
  0x6f   :  { %902 = vmatmul.mubr.msk.bf16.vlgmr.msra.gmra.mrb[0].mxu1 %vm212_vm0, %v115_v21  ;;  %382 = vmatpush1.bf16.msra.mxu0 %v1033_v22  ;;  %v1072_v55 = vld [vmem:[#allocation10 + $0x98] sm:$0xff]   ;;  %v1076_v59 = vld [vmem:[#allocation10 + $0xa0] sm:$0xff]   ;;  %v1080_v63 = vld [vmem:[#allocation10 + $0xa8] sm:$0xff]   ;;  %v475_v22 = vsub.s32 1, %v470_v18 }
  0x70   :  { %423 = vmatpush1.bf16.msra.mxu1 %v1036_v23  ;;  %383 = vmatprep.subr.bf16.mxu0 %v1041_v24  ;;  %v1081_v0 = vld [vmem:[#allocation10 + $0x70] sm:$0xff]   ;;  %v1085_v4 = vld [vmem:[#allocation10 + $0x78] sm:$0xff]   ;;  %v921_v8 = vld [vmem:[#allocation2] ss:$0 sm:$0xff]  ;;  %v483_v23 = vsub.s32 3, %v470_v18 }
  0x71   :  { %424 = vmatprep.subr.bf16.mxu1 %v1044_v25  ;;  %413 = vmatprep.mubr.bf16.mxu0 %v1214_v1  ;;  %v1083_v2 = vld [vmem:[#allocation10 + $0x30] sm:$0xff]   ;;  %v1086_v5 = vld [vmem:[#allocation10 + $0xf8] sm:$0xff]  }
  0x72   :  { %454 = vmatprep.mubr.bf16.mxu1 %v1214_v1  ;;  %v1082_v1 = vld [vmem:[#allocation10 + $0xf0] sm:$0xff]   ;;  %v1087_v6 = vld [vmem:[#allocation10 + $0x38] sm:$0xff]  }
  0x73   :  { %384 = vmatpush1.bf16.msra.mxu0 %v1039_v26  ;;  %v1084_v3 = vld [vmem:[#allocation10 + $0xb0] sm:$0xff]   ;;  %v1088_v7 = vld [vmem:[#allocation10 + $0xb8] sm:$0xff]  }
  0x74   :  { %425 = vmatpush1.bf16.msra.mxu1 %v1042_v27  ;;  %385 = vmatprep.subr.bf16.mxu0 %v1047_v28  ;;  %v467_v21 = vld [vmem:[%s1347_s4] sm:$0xf] }
  0x75   :  { %426 = vmatprep.subr.bf16.mxu1 %v1050_v29  ;;  %v472_v24 = vrot.slane %v467_v21, %v471_v19  ;;  %v480_v25 = vrot.slane %v467_v21, %v479_v20  ;;  %v476_v27 = vrot.slane %v467_v21, %v475_v22  ;;  %v484_v28 = vrot.slane %v467_v21, %v483_v23  ;;  %v497_v29 = vld [vmem:[%s1348_s5] sm:$0xf] }
  0x77   :  { %386 = vmatpush1.bf16.msra.mxu0 %v1045_v31 }
  0x78   :  { %427 = vmatpush1.bf16.msra.mxu1 %v1048_v32  ;;  %387 = vmatprep.subr.bf16.mxu0 %v1053_v34 }
  0x79   :  { %428 = vmatprep.subr.bf16.mxu1 %v1056_v36 }
  0x7b   :  { %388 = vmatpush1.bf16.msra.mxu0 %v1051_v37  ;;  %v502_v37 = vrot.slane %v497_v29, %v471_v19 }
  0x7c   :  { %429 = vmatpush1.bf16.msra.mxu1 %v1054_v38  ;;  %954 = vmatprep.subr.bf16.mxu0 %v1057_v39  ;;  %v510_v39 = vrot.slane %v497_v29, %v479_v20 }
  0x7d   :  { %976 = vmatprep.subr.bf16.mxu1 %v1058_v40 }
  0x7e   :  { %919 = vmatmul.mubr.msk.bf16.vlgmr.msra.gmra.mrb[4].mxu0 %vm212_vm0, %v98_v43 }
  0x7f   :  { %920 = vmatmul.mubr.msk.bf16.vlgmr.msra.gmra.mrb[4].mxu1 %vm212_vm0, %v98_v43  ;;  %955 = vmatpush3.bf16.msra.mxu0 %v1059_v41  ;;  %v506_v43 = vrot.slane %v497_v29, %v475_v22 }
  0x80   :  { %977 = vmatpush3.bf16.msra.mxu1 %v1060_v42  ;;  %956 = vmatprep.subr.bf16.mxu0 %v1061_v44 }
  0x81   :  { %978 = vmatprep.subr.bf16.mxu1 %v1062_v45  ;;  %602 = vperm.xlu0 %1008, %v921_v8   ;;  %v514_v45 = vrot.slane %v497_v29, %v483_v23 }
  0x83   :  { %957 = vmatpush3.bf16.msra.mxu0 %v1063_v46 }
  0x84   :  { %979 = vmatpush3.bf16.msra.mxu1 %v1064_v47  ;;  %958 = vmatprep.subr.bf16.mxu0 %v1065_v48 }
  0x85   :  { %980 = vmatprep.subr.bf16.mxu1 %v1066_v49 }
  0x87   :  { %959 = vmatpush3.bf16.msra.mxu0 %v1067_v50 }
  0x88   :  { %981 = vmatpush3.bf16.msra.mxu1 %v1068_v51  ;;  %960 = vmatprep.subr.bf16.mxu0 %v1069_v52 }
  0x89   :  { %982 = vmatprep.subr.bf16.mxu1 %v1070_v53 }
  0x8b   :  { %961 = vmatpush3.bf16.msra.mxu0 %v1071_v54 }
  0x8c   :  { %983 = vmatpush3.bf16.msra.mxu1 %v1072_v55  ;;  %962 = vmatprep.subr.bf16.mxu0 %v1073_v56 }
  0x8d   :  { %984 = vmatprep.subr.bf16.mxu1 %v1074_v57 }
  0x8f   :  { %963 = vmatpush3.bf16.msra.mxu0 %v1075_v58 }
  0x90   :  { %985 = vmatpush3.bf16.msra.mxu1 %v1076_v59  ;;  %964 = vmatprep.subr.bf16.mxu0 %v1077_v60 }
  0x91   :  { %986 = vmatprep.subr.bf16.mxu1 %v1078_v61 }
  0x93   :  { %965 = vmatpush3.bf16.msra.mxu0 %v1079_v62 }
  0x94   :  { %987 = vmatpush3.bf16.msra.mxu1 %v1080_v63  ;;  %966 = vmatprep.subr.bf16.mxu0 %v1081_v0 }
  0x95   :  { %988 = vmatprep.subr.bf16.mxu1 %v1082_v1 }
  0x97   :  { %967 = vmatpush3.bf16.msra.mxu0 %v1083_v2 }
  0x98   :  { %989 = vmatpush3.bf16.msra.mxu1 %v1084_v3  ;;  %968 = vmatprep.subr.bf16.mxu0 %v1085_v4 }
  0x99   :  { %990 = vmatprep.subr.bf16.mxu1 %v1086_v5 }
  0x9b   :  { %969 = vmatpush3.bf16.msra.mxu0 %v1087_v6 }
  0x9c   :  { %991 = vmatpush3.bf16.msra.mxu1 %v1088_v7 }
  0xf7   :  { %v466_v26 = vpop.xlane.xlu0 %465 }
  0xf8   :  { %v489_v30 = vmul.f32 %v472_v24, %v466_v26  ;;  %v491_v31 = vmul.f32 %v480_v25, %v466_v26  ;;  %v490_v34 = vmul.f32 %v476_v27, %v466_v26  ;;  %v492_v35 = vmul.f32 %v484_v28, %v466_v26 }
 0x100   :  { %v603_v2 = vpop.permute.xlu0 %602 }
 0x141   :  { %v250_v10 = vpop.f32.mrb[0].mxu0 }
 0x142   :  { %v291_v11 = vpop.f32.mrb[0].mxu1  ;;  %v252_v12 = vpop.f32.mrb[1].mxu0 }
 0x143   :  { %v293_v13 = vpop.f32.mrb[1].mxu1  ;;  %v254_v14 = vpop.f32.mrb[2].mxu0 }
 0x144   :  { %v295_v15 = vpop.f32.mrb[2].mxu1  ;;  %v255_v16 = vpop.f32.mrb[3].mxu0 }
 0x145   :  { %v296_v17 = vpop.f32.mrb[3].mxu1 }
 0x151   :  { %v415_v32 = vpop.f32.mrb[4].mxu0 }
 0x152   :  { %v456_v33 = vpop.f32.mrb[4].mxu1  ;;  %v416_v36 = vadd.f32 %v415_v32, %v250_v10  ;;  %v417_v40 = vpop.f32.mrb[5].mxu0 }
 0x153   :  { %v457_v38 = vadd.f32 %v456_v33, %v291_v11  ;;  %v458_v41 = vpop.f32.mrb[5].mxu1  ;;  %v418_v42 = vadd.f32 %v417_v40, %v252_v12  ;;  %v419_v46 = vpop.f32.mrb[6].mxu0 }
 0x154   :  { %v459_v44 = vadd.f32 %v458_v41, %v293_v13  ;;  %v460_v47 = vpop.f32.mrb[6].mxu1  ;;  %v493_v48 = vadd.f32 %v489_v30, %v416_v36  ;;  %v420_v50 = vpop.f32.mrb[7].mxu0 }
 0x155   :  { %v495_v49 = vadd.f32 %v491_v31, %v457_v38  ;;  %v461_v51 = vpop.f32.mrb[7].mxu1  ;;  %v494_v52 = vadd.f32 %v490_v34, %v418_v42 }
 0x156   :  { %v496_v53 = vadd.f32 %v492_v35, %v459_v44  ;;  %v519_v54 = vadd.f32 %v502_v37, %v493_v48 }
 0x157   :  { %v521_v55 = vadd.f32 %v510_v39, %v495_v49  ;;  %v520_v56 = vadd.f32 %v506_v43, %v494_v52 }
 0x158   :  { %v522_v57 = vadd.f32 %v514_v45, %v496_v53  ;;  %v523_v58 = vmax.f32 %v519_v54, 0.0 }
 0x159   :  { %v525_v59 = vmax.f32 %v521_v55, 0.0  ;;  %v524_v60 = vmax.f32 %v520_v56, 0.0 }
 0x15a   :  { %v526_v61 = vmax.f32 %v522_v57, 0.0  ;;  %v527_v0 = vpack.c.bf16 %v523_v58, %v523_v58 }
 0x15b   :  { %v528_v62 = vpack.c.bf16 %v524_v60, %v524_v60  ;;  %v529_v1 = vpack.c.bf16 %v525_v59, %v525_v59 }
 0x15c   :  { %v530_v63 = vpack.c.bf16 %v526_v61, %v526_v61 }
 0x15d   :  { %829 = vmatprep.mubr.bf16.mxu0 %v528_v62 }
 0x15e   :  { %869 = vmatprep.mubr.bf16.mxu1 %v530_v63  ;;  %830 = vmatmul.mubr.bf16.vlgmr.msra.gmra.mrb[8].mxu0 %v527_v0 }
 0x15f   :  { %870 = vmatmul.mubr.bf16.vlgmr.msra.gmra.mrb[8].mxu1 %v529_v1 }
 0x231   :  { %v970_v3 = vpop.f32.mrb[8].mxu0 }
 0x232   :  { %v992_v4 = vpop.f32.mrb[8].mxu1  ;;  %v971_v5 = vpop.f32.mrb[9].mxu0 }
 0x233   :  { %v993_v6 = vpop.f32.mrb[9].mxu1  ;;  %v972_v7 = vadd.f32 %v971_v5, %v970_v3  ;;  %v973_v9 = vpop.f32.mrb[10].mxu0 }
 0x234   :  { %v994_v8 = vadd.f32 %v993_v6, %v992_v4  ;;  %v995_v10 = vpop.f32.mrb[10].mxu1  ;;  %v974_v11 = vpop.f32.mrb[11].mxu0 }
 0x235   :  { %v996_v12 = vpop.f32.mrb[11].mxu1  ;;  %v832_v13 = vadd.f32 %v972_v7, %v603_v2 }
 0x237   :  { %v872_v14 = vadd.f32 %v994_v8, %v832_v13 }
 0x239   :  { %877 = vst [vmem:[%s1351_s8] sm:$0xff] %v872_v14 }
 0x23a   :  { %882 = vsyncpa [#allocation4], 1 }
 0x23b   :  { %883 = vsyncpa [#allocation6], 1 }
 0x23c   :  { %884 = vsyncpa [#allocation9], 1 }

</bundles_post_ra>
